<compile_context>
chip_gen: v7x
topology: tpu7x:2x2x1
jax: 0.10.0
libtpu: 0.0.40
codegen_flags: <defaults>
</compile_context>

<pallas_src>
import functools

import jax
import jax.numpy as jnp
from jax import lax
from jax.experimental import pallas as pl
from jax.experimental.pallas import tpu as pltpu  # noqa: F401  (TPU backend)


def _conv_gelu_kernel(w_ref, p_ref, b_ref, o_ref):
    # w_ref: (Cout, K), p_ref: (K, P), b_ref: (Cout, 1), o_ref: (Cout, P)
    v1 = jnp.dot(w_ref[...], p_ref[...],
                 preferred_element_type=jnp.float32) + b_ref[...]
    v2 = v1 * 0.5
    v6 = v1 + (v1 * v1 * v1) * 0.044715
    v8 = jnp.tanh(v6 * 0.7978845608028654)
    o_ref[...] = v2 * (v8 + 1.0)


@functools.partial(jax.jit, static_argnames=("stride", "dilation", "padding"))
def conv2d_gelu(x, weight, bias, *, stride=5, dilation=2, padding=3):
    """x: (1, Cin, H, W) f32; weight: (Cout, Cin, KH, KW) f32; bias: (Cout,) f32."""
    N, C, H, W = x.shape
    Cout, Cin, KH, KW = weight.shape
    assert N == 1 and Cin == C
    eff_kh = dilation * (KH - 1) + 1
    eff_kw = dilation * (KW - 1) + 1
    OH = (H + 2 * padding - eff_kh) // stride + 1
    OW = (W + 2 * padding - eff_kw) // stride + 1
    assert OH > 0 and OW > 0, "conv configuration produces empty output"

    K = C * KH * KW
    P = OH * OW

    # --- glue: im2col as a single fused XLA op (identity-kernel grouped conv).
    # Output-channel ordering is (c, kh, kw) row-major, which matches
    # weight.reshape(Cout, C*KH*KW).
    patches = lax.conv_general_dilated_patches(
        x,
        filter_shape=(KH, KW),
        window_strides=(stride, stride),
        padding=((padding, padding), (padding, padding)),
        rhs_dilation=(dilation, dilation),
    )  # (1, K, OH, OW)
    patches = patches.reshape(K, P)          # pure reshape (batch=1)

    wmat = weight.reshape(Cout, K)           # (Cout, K), already f32
    bcol = bias.reshape(Cout, 1)             # (Cout, 1)

    # --- hot path in Pallas: (Cout,K) @ (K,P) + bias + GELU(tanh), output
    # already in (Cout, P) layout so no post-kernel transpose is needed.
    out = pl.pallas_call(
        _conv_gelu_kernel,
        out_shape=jax.ShapeDtypeStruct((Cout, P), jnp.float32),
        in_specs=[
            pl.BlockSpec((Cout, K), lambda: (0, 0)),
            pl.BlockSpec((K, P), lambda: (0, 0)),
            pl.BlockSpec((Cout, 1), lambda: (0, 0)),
        ],
        out_specs=pl.BlockSpec((Cout, P), lambda: (0, 0)),
    )(wmat, patches, bcol)

    # (Cout, P) -> (1, Cout, OH, OW): pure reshape, no transpose.
    return out.reshape(1, Cout, OH, OW)


if __name__ == "__main__":
    key = jax.random.PRNGKey(0)
    kx, kw, kb = jax.random.split(key, 3)

    Cin, Cout, KH, KW = 5, 12, 10, 10
    # Deterministic parameter init mimicking PyTorch's Conv2d default
    # (uniform in +-1/sqrt(fan_in)).
    fan_in = Cin * KH * KW
    bound = 1.0 / (fan_in ** 0.5)
    weight = jax.random.uniform(kw, (Cout, Cin, KH, KW), jnp.float32, -bound, bound)
    bias = jax.random.uniform(kb, (Cout,), jnp.float32, -bound, bound)

    # TODO(synk): the original script's (1, 5, 12, 48) input is invalid for this
    # conv (dilated 19x19 kernel > padded 18-high input; PyTorch raises), so the
    # smallest-style valid spatial size consistent with the module is used.
    x = jax.random.normal(kx, (1, Cin, 24, 48), jnp.float32)

    y = conv2d_gelu(x, weight, bias)
    jax.block_until_ready(y)
    assert y.shape == (1, 12, 3, 8), y.shape
    assert bool(jnp.all(jnp.isfinite(y)))
    print("KERNEL_OK")
</pallas_src>

<mosaic_0001>
module attributes {stable_mosaic.version = 11 : i64} {
  func.func @_conv_gelu_kernel(%arg0: memref<12x500xf32, #tpu.memory_space<vmem>>, %arg1: memref<500x24xf32, #tpu.memory_space<vmem>>, %arg2: memref<12x1xf32, #tpu.memory_space<vmem>>, %arg3: memref<12x24xf32, #tpu.memory_space<vmem>>) attributes {dimension_semantics = [], scalar_prefetch = 0 : i64, scratch_operands = 0 : i64, tpu.core_type = #tpu.core_type<tc>} {
    %c0 = arith.constant 0 : index
    %c0_0 = arith.constant 0 : index
    %0 = vector.load %arg0[%c0, %c0_0] : memref<12x500xf32, #tpu.memory_space<vmem>>, vector<12x500xf32>
    %c0_1 = arith.constant 0 : index
    %c0_2 = arith.constant 0 : index
    %1 = vector.load %arg1[%c0_1, %c0_2] : memref<500x24xf32, #tpu.memory_space<vmem>>, vector<500x24xf32>
    %cst = arith.constant dense<0.000000e+00> : vector<12x24xf32>
    %2 = tpu.matmul %0, %1, %cst {dimension_numbers = #tpu.dot_dimension_numbers<[1], [0], [0], [1], [0, 0, 1, 1], [], []>} : vector<12x500xf32>, vector<500x24xf32>, vector<12x24xf32> -> vector<12x24xf32>
    %c0_3 = arith.constant 0 : index
    %c0_4 = arith.constant 0 : index
    %3 = vector.load %arg2[%c0_3, %c0_4] : memref<12x1xf32, #tpu.memory_space<vmem>>, vector<12x1xf32>
    %4 = vector.broadcast %3 : vector<12x1xf32> to vector<12x24xf32>
    %5 = arith.addf %2, %4 : vector<12x24xf32>
    %cst_5 = arith.constant 5.000000e-01 : f32
    %6 = vector.broadcast %cst_5 : f32 to vector<12x24xf32>
    %7 = arith.mulf %5, %6 : vector<12x24xf32>
    %8 = arith.mulf %5, %5 : vector<12x24xf32>
    %9 = arith.mulf %8, %5 : vector<12x24xf32>
    %cst_6 = arith.constant 4.471500e-02 : f32
    %10 = vector.broadcast %cst_6 : f32 to vector<12x24xf32>
    %11 = arith.mulf %9, %10 : vector<12x24xf32>
    %12 = arith.addf %5, %11 : vector<12x24xf32>
    %cst_7 = arith.constant 0.797884583 : f32
    %13 = vector.broadcast %cst_7 : f32 to vector<12x24xf32>
    %14 = arith.mulf %12, %13 : vector<12x24xf32>
    %15 = math.tanh %14 : vector<12x24xf32>
    %cst_8 = arith.constant 1.000000e+00 : f32
    %16 = vector.broadcast %cst_8 : f32 to vector<12x24xf32>
    %17 = arith.addf %15, %16 : vector<12x24xf32>
    %18 = arith.mulf %7, %17 : vector<12x24xf32>
    %c0_9 = arith.constant 0 : index
    %c0_10 = arith.constant 0 : index
    %19 = vector.load %arg3[%c0_9, %c0_10] : memref<12x24xf32, #tpu.memory_space<vmem>>, vector<12x24xf32>
    tpu.vector_store %arg3[%c0_9, %c0_10], %18 {strides = array<i32>} : memref<12x24xf32, #tpu.memory_space<vmem>>, vector<12x24xf32>,
    return
  }
}

</mosaic_0001>

<bundles_post_ra>
// kernel: conv2d_gelu.1
= control target key start
LH: loop header
LB: loop body
LE: loop exit
PB: predicated region body
PF: predicated region fallthrough
CT: control target
= control target key end

     0   :  { %v410_v0 = vmov 0.0|0.0   ;;  %v411_v6 = vmov 0   ;;  %vm97_vm0 = vcmask 949248   ;;  %vm104_vm1 = vcmask 1043456   ;;  %s675_s1 = inlined_call_operand.vmem [shape: f32[500,24], index: 1, kind: input, shape index: {}]   ;;  %s676_s0 = inlined_call_operand.vmem [shape: f32[12,500], index: 0, kind: input, shape index: {}]   ;;  %s677_s2 = inlined_call_operand.vmem [shape: f32[12,1], index: 2, kind: input, shape index: {}]   ;;  %s678_s3 = inlined_call_operand.vmem [shape: f32[12,24], index: 3, kind: output, shape index: {}]  }
   0x1   :  { %357 = vmatprep.subr.bf16.mxu1 %v410_v0  ;;  %v54_v1 = vld [vmem:[%s675_s1 + $0x100] sm:$0xff]  ;;  %v55_v2 = vld [vmem:[%s675_s1 + $0x108] sm:$0xff]  ;;  %v56_v3 = vld [vmem:[%s675_s1 + $0x110] sm:$0xff]  ;;  %405 = vset.pattern.permute.xlu0 %v411_v6  ;;  %vm276_vm2 = vcmask 195584   ;;  %vm278_vm3 = vcmask 191488  }
   0x2   :  { %v358_v4 = vpack.c.bf16 %v55_v2, %v54_v1  ;;  %v57_v5 = vld [vmem:[%s675_s1 + $0x118] sm:$0xff]  ;;  %v38_v8 = vld [vmem:[%s675_s1 + $0x80] sm:$0xff]  ;;  %v39_v9 = vld [vmem:[%s675_s1 + $0x88] sm:$0xff] }
   0x3   :  { %v361_v7 = vpack.c.bf16 %v57_v5, %v56_v3  ;;  %v58_v10 = vld [vmem:[%s675_s1 + $0x120] sm:$0xff]  ;;  %v59_v11 = vld [vmem:[%s675_s1 + $0x128] sm:$0xff]  ;;  %v325_v12 = vpack.c.bf16 %v39_v9, %v38_v8  ;;  %v40_v15 = vld [vmem:[%s675_s1 + $0x90] sm:$0xff] }
   0x4   :  { %359 = vmatpush1.bf16.msra.mxu1 %v358_v4  ;;  %v22_v13 = vld [vmem:[%s675_s1] sm:$0xff]  ;;  %v23_v14 = vld [vmem:[%s675_s1 + $0x8] sm:$0xff]  ;;  %v41_v16 = vld [vmem:[%s675_s1 + $0x98] sm:$0xff]  ;;  %v364_v20 = vpack.c.bf16 %v59_v11, %v58_v10 }
   0x5   :  { %360 = vmatprep.subr.bf16.mxu1 %v410_v0  ;;  %326 = vmatprep.subr.bf16.mxu0 %v325_v12  ;;  %v327_v17 = vpack.c.bf16 %v23_v14, %v22_v13  ;;  %v329_v18 = vpack.c.bf16 %v41_v16, %v40_v15  ;;  %v24_v19 = vld [vmem:[%s675_s1 + $0x10] sm:$0xff]  ;;  %v25_v21 = vld [vmem:[%s675_s1 + $0x18] sm:$0xff]  ;;  %v42_v22 = vld [vmem:[%s675_s1 + $0xa0] sm:$0xff] }
   0x6   :  { %v43_v23 = vld [vmem:[%s675_s1 + $0xa8] sm:$0xff]  ;;  %v60_v24 = vld [vmem:[%s675_s1 + $0x130] sm:$0xff]  ;;  %v61_v25 = vld [vmem:[%s675_s1 + $0x138] sm:$0xff]  ;;  %v331_v26 = vpack.c.bf16 %v25_v21, %v24_v19 }
   0x7   :  { %328 = vmatpush3.bf16.msra.mxu0 %v327_v17  ;;  %v333_v27 = vpack.c.bf16 %v43_v23, %v42_v22  ;;  %v26_v28 = vld [vmem:[%s675_s1 + $0x20] sm:$0xff]  ;;  %v27_v29 = vld [vmem:[%s675_s1 + $0x28] sm:$0xff]  ;;  %v44_v30 = vld [vmem:[%s675_s1 + $0xb0] sm:$0xff]  ;;  %v367_v32 = vpack.c.bf16 %v61_v25, %v60_v24 }
   0x8   :  { %362 = vmatpush1.bf16.msra.mxu1 %v361_v7  ;;  %330 = vmatprep.subr.bf16.mxu0 %v329_v18  ;;  %v45_v31 = vld [vmem:[%s675_s1 + $0xb8] sm:$0xff]  ;;  %v62_v33 = vld [vmem:[%s675_s1 + $0x140] sm:$0xff]  ;;  %v63_v34 = vld [vmem:[%s675_s1 + $0x148] sm:$0xff]  ;;  %v335_v35 = vpack.c.bf16 %v27_v29, %v26_v28 }
   0x9   :  { %363 = vmatprep.subr.bf16.mxu1 %v410_v0  ;;  %v337_v36 = vpack.c.bf16 %v45_v31, %v44_v30  ;;  %v28_v37 = vld [vmem:[%s675_s1 + $0x30] sm:$0xff]  ;;  %v29_v38 = vld [vmem:[%s675_s1 + $0x38] sm:$0xff]  ;;  %v46_v39 = vld [vmem:[%s675_s1 + $0xc0] sm:$0xff]  ;;  %v370_v41 = vpack.c.bf16 %v63_v34, %v62_v33 }
   0xa   :  { %v47_v40 = vld [vmem:[%s675_s1 + $0xc8] sm:$0xff]  ;;  %v64_v42 = vld [vmem:[%s675_s1 + $0x150] sm:$0xff]  ;;  %v65_v43 = vld [vmem:[%s675_s1 + $0x158] sm:$0xff]  ;;  %v339_v44 = vpack.c.bf16 %v29_v38, %v28_v37 }
   0xb   :  { %332 = vmatpush3.bf16.msra.mxu0 %v331_v26  ;;  %v341_v45 = vpack.c.bf16 %v47_v40, %v46_v39  ;;  %v30_v46 = vld [vmem:[%s675_s1 + $0x40] sm:$0xff]  ;;  %v31_v47 = vld [vmem:[%s675_s1 + $0x48] sm:$0xff]  ;;  %v48_v48 = vld [vmem:[%s675_s1 + $0xd0] sm:$0xff]  ;;  %v373_v50 = vpack.c.bf16 %v65_v43, %v64_v42  ;;  %v412_v39 = vmov 0.0  }
   0xc   :  { %365 = vmatpush1.bf16.msra.mxu1 %v364_v20  ;;  %334 = vmatprep.subr.bf16.mxu0 %v333_v27  ;;  %v49_v49 = vld [vmem:[%s675_s1 + $0xd8] sm:$0xff]  ;;  %v15_v51 = vld [vmem:[%s676_s0 + $0x8] sm:$0xff]  ;;  %v66_v52 = vld [vmem:[%s675_s1 + $0x160] sm:$0xff]  ;;  %v343_v54 = vpack.c.bf16 %v31_v47, %v30_v46 }
   0xd   :  { %366 = vmatprep.subr.bf16.mxu1 %v410_v0  ;;  %v67_v53 = vld [vmem:[%s675_s1 + $0x168] sm:$0xff]  ;;  %v345_v55 = vpack.c.bf16 %v49_v49, %v48_v48  ;;  %v32_v56 = vld [vmem:[%s675_s1 + $0x50] sm:$0xff]  ;;  %v33_v57 = vld [vmem:[%s675_s1 + $0x58] sm:$0xff]  ;;  %172 = vmatprep.mubr.f32.mxu0 %v15_v51 }
   0xe   :  { %v50_v58 = vld [vmem:[%s675_s1 + $0xe0] sm:$0xff]  ;;  %v51_v59 = vld [vmem:[%s675_s1 + $0xe8] sm:$0xff]  ;;  %v17_v60 = vld [vmem:[%s676_s0 + $0x18] sm:$0xff]  ;;  %v376_v61 = vpack.c.bf16 %v67_v53, %v66_v52  ;;  %v347_v2 = vpack.c.bf16 %v33_v57, %v32_v56 }
   0xf   :  { %336 = vmatpush3.bf16.msra.mxu0 %v335_v35  ;;  %285 = vmatprep.mubr.msk.f32.mxu1 %vm97_vm0, %v17_v60  ;;  %v85_v62 = vld [vmem:[%s677_s2] sm:$0xff]  ;;  %v68_v63 = vld [vmem:[%s675_s1 + $0x170] sm:$0xff]  ;;  %v69_v1 = vld [vmem:[%s675_s1 + $0x178] sm:$0xff]  ;;  %v349_v3 = vpack.c.bf16 %v51_v59, %v50_v58 }
  0x10   :  { %368 = vmatpush1.bf16.msra.mxu1 %v367_v32  ;;  %338 = vmatprep.subr.bf16.mxu0 %v337_v36  ;;  %v34_v4 = vld [vmem:[%s675_s1 + $0x60] sm:$0xff]  ;;  %v35_v5 = vld [vmem:[%s675_s1 + $0x68] sm:$0xff]  ;;  %v52_v6 = vld [vmem:[%s675_s1 + $0xf0] sm:$0xff]  ;;  %v379_v9 = vpack.c.bf16 %v69_v1, %v68_v63 }
  0x11   :  { %369 = vmatprep.subr.bf16.mxu1 %v410_v0  ;;  %89 = vperm.xlu0 %405, %v85_v62   ;;  %v53_v7 = vld [vmem:[%s675_s1 + $0xf8] sm:$0xff]  ;;  %v86_v8 = vld [vmem:[%s677_s2 + $0x8] sm:$0xf]  ;;  %v70_v10 = vld [vmem:[%s675_s1 + $0x180] sm:$0xff]  ;;  %v351_v12 = vpack.c.bf16 %v35_v5, %v34_v4 }
  0x12   :  { %v71_v11 = vld [vmem:[%s675_s1 + $0x188] sm:$0xff]  ;;  %v353_v13 = vpack.c.bf16 %v53_v7, %v52_v6  ;;  %v36_v14 = vld [vmem:[%s675_s1 + $0x70] sm:$0xff]  ;;  %v37_v15 = vld [vmem:[%s675_s1 + $0x78] sm:$0xff] }
  0x13   :  { %340 = vmatpush3.bf16.msra.mxu0 %v339_v44  ;;  %v382_v16 = vpack.c.bf16 %v71_v11, %v70_v10  ;;  %v72_v17 = vld [vmem:[%s675_s1 + $0x190] sm:$0xff]  ;;  %v73_v18 = vld [vmem:[%s675_s1 + $0x198] sm:$0xff]  ;;  %v355_v19 = vpack.c.bf16 %v37_v15, %v36_v14  ;;  %v74_v21 = vld [vmem:[%s675_s1 + $0x1a0] sm:$0xff] }
  0x14   :  { %371 = vmatpush1.bf16.msra.mxu1 %v370_v41  ;;  %342 = vmatprep.subr.bf16.mxu0 %v341_v45  ;;  %v385_v20 = vpack.c.bf16 %v73_v18, %v72_v17  ;;  %v75_v22 = vld [vmem:[%s675_s1 + $0x1a8] sm:$0xff]  ;;  %v14_v23 = vld [vmem:[%s676_s0] sm:$0xff]  ;;  %v76_v26 = vld [vmem:[%s675_s1 + $0x1b0] sm:$0xff] }
  0x15   :  { %372 = vmatprep.subr.bf16.mxu1 %v410_v0  ;;  %94 = vperm.xlu0 %405, %v86_v8   ;;  %v19_v24 = vld [vmem:[%s676_s0 + $0x28] sm:$0xf]  ;;  %v388_v25 = vpack.c.bf16 %v75_v22, %v74_v21  ;;  %v77_v27 = vld [vmem:[%s675_s1 + $0x1b8] sm:$0xff]  ;;  %v18_v28 = vld [vmem:[%s676_s0 + $0x20] sm:$0xf] }
  0x16   :  { %v391_v29 = vpack.c.bf16 %v77_v27, %v76_v26  ;;  %v78_v30 = vld [vmem:[%s675_s1 + $0x1c0] sm:$0xff]  ;;  %v79_v31 = vld [vmem:[%s675_s1 + $0x1c8] sm:$0xff]  ;;  %v80_v33 = vld [vmem:[%s675_s1 + $0x1d0] sm:$0xff] }
  0x17   :  { %344 = vmatpush3.bf16.msra.mxu0 %v343_v54  ;;  %v394_v32 = vpack.c.bf16 %v79_v31, %v78_v30  ;;  %v81_v34 = vld [vmem:[%s675_s1 + $0x1d8] sm:$0xff]  ;;  %v82_v36 = vld [vmem:[%s675_s1 + $0x1e0] sm:$0xff]  ;;  %v83_v37 = vld [vmem:[%s675_s1 + $0x1e8] sm:$0xff] }
  0x18   :  { %374 = vmatpush1.bf16.msra.mxu1 %v373_v50  ;;  %346 = vmatprep.subr.bf16.mxu0 %v345_v55  ;;  %v397_v35 = vpack.c.bf16 %v81_v34, %v80_v33  ;;  %v400_v38 = vpack.c.bf16 %v83_v37, %v82_v36  ;;  %v84_v40 = vld [vmem:[%s675_s1 + $0x1f0] sm:$0xf]  ;;  %v21_v42 = vld [vmem:[%s676_s0 + $0x38] sm:$0xf] }
  0x19   :  { %375 = vmatprep.subr.bf16.mxu1 %v410_v0  ;;  %v16_v41 = vld [vmem:[%s676_s0 + $0x10] sm:$0xff] }
  0x1b   :  { %348 = vmatpush3.bf16.msra.mxu0 %v347_v2 }
  0x1c   :  { %377 = vmatpush1.bf16.msra.mxu1 %v376_v61  ;;  %350 = vmatprep.subr.bf16.mxu0 %v349_v3 }
  0x1d   :  { %378 = vmatprep.subr.bf16.mxu1 %v410_v0 }
  0x1f   :  { %352 = vmatpush3.bf16.msra.mxu0 %v351_v12 }
  0x20   :  { %380 = vmatpush1.bf16.msra.mxu1 %v379_v9  ;;  %354 = vmatprep.subr.bf16.mxu0 %v353_v13 }
  0x21   :  { %381 = vmatprep.subr.bf16.mxu1 %v410_v0 }
  0x23   :  { %356 = vmatpush3.bf16.msra.mxu0 %v355_v19 }
  0x24   :  { %383 = vmatpush1.bf16.msra.mxu1 %v382_v16 }
  0x25   :  { %384 = vmatprep.subr.bf16.mxu1 %v410_v0 }
  0x26   :  { %173 = vmatmul.mubr.f32.vlgmr.msra.gmra.mrb[0].mxu0 %v14_v23 }
  0x27   :  { %177 = vmatprep.mubr.f32.mxu0 %v19_v24 }
  0x28   :  { %386 = vmatpush1.bf16.msra.mxu1 %v385_v20 }
  0x29   :  { %387 = vmatprep.subr.bf16.mxu1 %v410_v0 }
  0x2a   :  { %178 = vmatmul.mubr.f32.gmra.mrb[2].mxu0 %v18_v28 }
  0x2c   :  { %389 = vmatpush1.bf16.msra.mxu1 %v388_v25 }
  0x2d   :  { %390 = vmatprep.subr.bf16.mxu1 %v410_v0 }
  0x30   :  { %392 = vmatpush1.bf16.msra.mxu1 %v391_v29 }
  0x31   :  { %393 = vmatprep.subr.bf16.mxu1 %v410_v0 }
  0x34   :  { %395 = vmatpush1.bf16.msra.mxu1 %v394_v32 }
  0x35   :  { %396 = vmatprep.subr.bf16.mxu1 %v410_v0 }
  0x38   :  { %398 = vmatpush1.bf16.msra.mxu1 %v397_v35 }
  0x39   :  { %399 = vmatprep.subr.bf16.mxu1 %v410_v0  ;;  %v20_v0 = vld [vmem:[%s676_s0 + $0x30] sm:$0xf] }
  0x3c   :  { %401 = vmatpush1.bf16.msra.mxu1 %v400_v38 }
  0x3d   :  { %243 = vmatprep.subr.mxu1 %v412_v39 }
  0x40   :  { %284 = vmatpush1.msk.msra.mxu1 %vm104_vm1, %v84_v40 }
  0x41   :  { %248 = vmatmul.mubr.f32.vlgmr.msra.gmra.mrb[0].mxu1 %v16_v41 }
  0x42   :  { %286 = vmatprep.mubr.msk.f32.mxu1 %vm97_vm0, %v21_v42 }
  0x45   :  { %253 = vmatmul.mubr.f32.gmra.mrb[2].mxu1 %v20_v0 }
  0x90   :  { %v90_v49 = vpop.permute.xlu0 %89 }
  0x94   :  { %v95_v51 = vpop.permute.xlu0 %94 }
  0xf9   :  { %v319_v43 = vpop.f32.mrb[0].mxu0 }
  0xfa   :  { %v320_v44 = vpop.f32.mrb[1].mxu0 }
  0xfb   :  { %v321_v45 = vadd.f32 %v320_v44, %v319_v43 }
  0xfd   :  { %v322_v46 = vpop.f32.mrb[2].mxu0  ;;  %v175_v50 = vadd.f32 %v321_v45, %v90_v49 }
  0xfe   :  { %v323_v47 = vpop.f32.mrb[3].mxu0 }
  0xff   :  { %v324_v48 = vadd.f32 %v323_v47, %v322_v46 }
 0x101   :  { %v180_v55 = vadd.f32 %v324_v48, %v95_v51 }
 0x114   :  { %v249_v52 = vpop.f32.mrb[0].mxu1 }
 0x115   :  { %v250_v53 = vadd.f32 %v249_v52, %v175_v50  ;;  %v251_v54 = vpop.f32.mrb[1].mxu1 }
 0x117   :  { %v260_v56 = vmul.f32 %v250_v53, %v250_v53  ;;  %v258_v7 = vmul.f32 0.5, %v250_v53 }
 0x118   :  { %v254_v57 = vpop.f32.mrb[2].mxu1 }
 0x119   :  { %v262_v58 = vmul.f32 %v260_v56, %v250_v53  ;;  %v255_v59 = vadd.f32 %v254_v57, %v180_v55  ;;  %v256_v60 = vpop.f32.mrb[3].mxu1 }
 0x11b   :  { %v264_v61 = vmul.f32 0.044715, %v262_v58  ;;  %v261_v62 = vmul.f32 %v255_v59, %v255_v59  ;;  %v259_v11 = vmul.f32 0.5, %v255_v59 }
 0x11d   :  { %v266_v63 = vadd.f32 %v264_v61, %v250_v53  ;;  %v263_v1 = vmul.f32 %v261_v62, %v255_v59 }
 0x11f   :  { %v268_v2 = vmul.f32 0.7978846, %v266_v63  ;;  %v265_v3 = vmul.f32 0.044715, %v263_v1 }
 0x121   :  { %406 = vtanh.f32 %v268_v2  ;;  %v267_v4 = vadd.f32 %v265_v3, %v255_v59 }
 0x123   :  { %v269_v5 = vmul.f32 0.7978846, %v267_v4 }
 0x125   :  { %408 = vtanh.f32 %v269_v5 }
 0x12b   :  { %v407_v6 = vpop.eup %406 }
 0x12c   :  { %v272_v8 = vadd.f32 1.0, %v407_v6 }
 0x12e   :  { %v274_v9 = vmul.f32 %v272_v8, %v258_v7 }
 0x12f   :  { %v409_v10 = vpop.eup %408 }
 0x130   :  { %277 = vst.msk [vmem:[%s678_s3] sm:$0xff] %vm276_vm2, %v274_v9  ;;  %v273_v12 = vadd.f32 1.0, %v409_v10 }
 0x132   :  { %v275_v13 = vmul.f32 %v273_v12, %v259_v11 }
 0x134   :  { %279 = vst.msk [vmem:[%s678_s3 + $0x8] sm:$0xf] %vm278_vm3, %v275_v13 }

</bundles_post_ra>
